<compile_context>
chip_gen: v6e
topology: v6e:2x2x1
jax: 0.10.0
libtpu: 0.0.40
codegen_flags: <defaults>
</compile_context>

<pallas_src>
import jax
import jax.numpy as jnp
from jax import lax
from jax.experimental import pallas as pl
from jax.experimental.pallas import tpu as pltpu


def _round_up(a, b):
    return ((a + b - 1) // b) * b


def _make_kernel(num_hidden, num_chunks, chunk, in_dim):
    """Fused MLP kernel body for a fixed architecture / chunking."""

    def kernel(x_ref, w1_ref, b1_ref, *rest):
        # rest = [wh_0, bh_0, ..., wh_{H-1}, bh_{H-1}, w2_ref, b2_ref, o_ref]
        hidden_refs = rest[: 2 * num_hidden]
        w2_ref, b2_ref, o_ref = rest[2 * num_hidden:]

        def body(c, carry):
            start = pl.multiple_of(c * chunk, 128)               # lane-aligned chunk start
            xb = x_ref[:, pl.ds(start, chunk)]                   # (in_dim, chunk) f32

            # First Linear (in_dim <= 3): unrolled sum of outer products + bias, on the VPU.
            h = b1_ref[...]                                       # (width, 1) f32
            for j in range(in_dim):
                h = h + w1_ref[:, j:j + 1] * xb[j:j + 1, :]       # -> (width, chunk)
            h = jnp.maximum(h, 0.0)

            # Hidden layers: bf16 operands, f32 accumulation on the MXU.
            for li in range(num_hidden):                          # static unroll over layers
                w = hidden_refs[2 * li][...]                      # (width, width) bf16
                b = hidden_refs[2 * li + 1][...]                  # (width, 1) f32
                h = jnp.dot(w, h.astype(jnp.bfloat16),
                            preferred_element_type=jnp.float32) + b
                h = jnp.maximum(h, 0.0)

            # Final Linear(width, 1): MXU matmul with M padded to 8; keep row 0.
            z = jnp.dot(w2_ref[...], h,
                        preferred_element_type=jnp.float32)[0:1, :] + b2_ref[...]
            # sigmoid via EUP exp + approximate reciprocal (EUP slot).
            e = jnp.exp(-z)                                       # (1, chunk)
            o_ref[:, pl.ds(start, chunk)] = (
                pl.reciprocal(1.0 + e, approx=True).astype(o_ref.dtype))
            return carry

        if num_chunks == 1:
            body(jnp.int32(0), 0)
        else:
            lax.fori_loop(0, num_chunks, body, 0, unroll=min(num_chunks, 8))

    return kernel


def init_luminance_tone_mapper_params(key, hidden=0, width=128, input_type="Gray"):
    """Params matching LuminanceToneMapper.weights_biases_init():
    xavier_uniform weights, ones biases.  Weights are kept in torch (out, in) layout,
    which is exactly what the transposed (samples-on-lanes) kernel wants."""
    in_dim = 1 if str(input_type) == "Gray" else 3

    def xavier(k, fan_in, fan_out):
        bound = (6.0 / (fan_in + fan_out)) ** 0.5
        return jax.random.uniform(k, (fan_out, fan_in), jnp.float32, -bound, bound)

    keys = jax.random.split(key, hidden + 2)
    return {
        "w1": xavier(keys[0], in_dim, width),                 # (width, in_dim)
        "b1": jnp.ones((width, 1), jnp.float32),
        "hidden": [(xavier(keys[1 + i], width, width),        # (width, width)
                    jnp.ones((width, 1), jnp.float32)) for i in range(hidden)],
        "w2": xavier(keys[hidden + 1], width, 1),             # (1, width)
        "b2": jnp.ones((1, 1), jnp.float32),
    }


def luminance_tone_mapper(radiance, params, *, tile_m=4096, chunk_m=512):
    """Applies the tone-mapping MLP to radiance of shape (..., in_dim)."""
    w1 = params["w1"]
    width, in_dim = w1.shape
    num_hidden = len(params["hidden"])
    assert in_dim <= 8, "input feature dim must be small (Gray=1 / RGB=3)"

    orig_shape = radiance.shape
    assert orig_shape[-1] == in_dim, "last dim must equal the MLP input dim"
    x = radiance.reshape(-1, in_dim).astype(jnp.float32)       # (n, in_dim)
    n = x.shape[0]

    # ---- tiling: big lane-dense tiles, padded N (no divisibility requirement) ----
    n128 = _round_up(n, 128)
    tile = min(_round_up(tile_m, 128), n128)
    # keep >= 2 grid programs when there is enough work (megacore / 2 TensorCores per chip)
    half = _round_up(max(n128 // 2, 128), 128)
    if n128 >= 256 and tile > half:
        tile = half
    chunk = min(_round_up(chunk_m, 128), tile)                 # in-kernel chunk (lane axis)
    tile = _round_up(tile, chunk)                              # tile = num_chunks * chunk
    n_pad = _round_up(n, tile)
    num_tiles = n_pad // tile
    num_chunks = tile // chunk

    # ---- transposed operands: samples on the lane axis, feature dim UNPADDED ----
    xt = jnp.pad(x, ((0, n_pad - n), (0, 0))).T               # (in_dim, n_pad), zero cols
    w2p = jnp.pad(params["w2"], ((0, 8 - 1), (0, 0)))         # (8, width), rows 1..7 zero

    full = lambda shape: pl.BlockSpec(shape, lambda i: (0, 0))
    in_specs = [pl.BlockSpec((in_dim, tile), lambda i: (0, i)),  # x tile (lane-dense)
                full((width, in_dim)),                            # w1
                full((width, 1))]                                 # b1
    args = [xt, w1, params["b1"]]
    for (w, b) in params["hidden"]:
        in_specs += [full((width, width)), full((width, 1))]
        args += [w.astype(jnp.bfloat16), b]                     # bf16 weights for the MXU
    in_specs += [full((8, width)), full((1, 1))]                # w2 (M-padded), b2
    args += [w2p, params["b2"]]

    kernel = _make_kernel(num_hidden, num_chunks, chunk, in_dim)

    out = pl.pallas_call(
        kernel,
        out_shape=jax.ShapeDtypeStruct((1, n_pad), jnp.float32),
        grid_spec=pltpu.PrefetchScalarGridSpec(
            num_scalar_prefetch=0,
            grid=(num_tiles,),
            in_specs=in_specs,
            out_specs=pl.BlockSpec((1, tile), lambda i: (0, i)),
        ),
        compiler_params=pltpu.CompilerParams(
            dimension_semantics=("parallel",),
            vmem_limit_bytes=32 * 1024 * 1024),
    )(*args)

    # drop padded samples and restore the original leading shape
    return out.reshape(-1)[:n].reshape(orig_shape[:-1] + (1,))


def _reference(radiance, params):
    """Pure-JAX f32 reference of the PyTorch forward pass (highest matmul precision)."""
    hp = jax.lax.Precision.HIGHEST
    in_dim = params["w1"].shape[1]
    x = radiance.reshape(-1, in_dim).astype(jnp.float32)
    h = jax.nn.relu(jnp.dot(x, params["w1"].T, precision=hp) + params["b1"].T)
    for (w, b) in params["hidden"]:
        h = jax.nn.relu(jnp.dot(h, w.T, precision=hp) + b.T)
    z = jnp.dot(h, params["w2"].T, precision=hp) + params["b2"]
    return jax.nn.sigmoid(z).reshape(radiance.shape[:-1] + (1,))


if __name__ == "__main__":
    key = jax.random.PRNGKey(0)
    k_p1, k_p2, k_d1, k_d2 = jax.random.split(key, 4)

    # Config A: module defaults (hidden=0, width=128, input_type='Gray').
    params_a = init_luminance_tone_mapper_params(k_p1, hidden=0, width=128,
                                                 input_type="Gray")
    rad_a = jax.random.normal(k_d1, (2, 16, 16, 1), jnp.float32)   # 512 samples
    out_a = jax.block_until_ready(luminance_tone_mapper(rad_a, params_a))
    ref_a = _reference(rad_a, params_a)
    assert out_a.shape == (2, 16, 16, 1)
    assert float(jnp.max(jnp.abs(out_a - ref_a))) < 5e-3, "config A mismatch vs reference"

    # Config B: hidden=1, RGB input; small tile/chunk to also exercise the in-kernel
    # chunk loop and a multi-program grid.
    params_b = init_luminance_tone_mapper_params(k_p2, hidden=1, width=128,
                                                 input_type="RGB")
    rad_b = jax.random.normal(k_d2, (2, 16, 16, 3), jnp.float32)   # 512 samples, 3 channels
    out_b = jax.block_until_ready(
        luminance_tone_mapper(rad_b, params_b, tile_m=512, chunk_m=128))
    ref_b = _reference(rad_b, params_b)
    assert out_b.shape == (2, 16, 16, 1)
    # hidden matmuls run in bf16 (f32 accumulate) on the MXU -> looser tolerance vs f32 ref
    assert float(jnp.max(jnp.abs(out_b - ref_b))) < 3e-2, "config B mismatch vs reference"

    print("KERNEL_OK")
</pallas_src>

<mosaic_0001>
module attributes {stable_mosaic.version = 11 : i64} {
  func.func @kernel(%arg0: i32, %arg1: memref<1x256xf32, #tpu.memory_space<vmem>>, %arg2: memref<128x1xf32, #tpu.memory_space<vmem>>, %arg3: memref<128x1xf32, #tpu.memory_space<vmem>>, %arg4: memref<8x128xf32, #tpu.memory_space<vmem>>, %arg5: memref<1x1xf32, #tpu.memory_space<vmem>>, %arg6: memref<1x256xf32, #tpu.memory_space<vmem>>) attributes {dimension_semantics = [#tpu.dimension_semantics<parallel>], iteration_bounds = array<i64: 2>, scalar_prefetch = 0 : i64, scratch_operands = 0 : i64, tpu.core_type = #tpu.core_type<tc>, window_params = [{transform_indices = @transform_0, window_bounds = array<i64: 1, 256>}, {pipeline_mode = #tpu.pipeline_mode<synchronous>, transform_indices = @transform_1, window_bounds = array<i64: 128, 1>}, {pipeline_mode = #tpu.pipeline_mode<synchronous>, transform_indices = @transform_2, window_bounds = array<i64: 128, 1>}, {pipeline_mode = #tpu.pipeline_mode<synchronous>, transform_indices = @transform_3, window_bounds = array<i64: 8, 128>}, {pipeline_mode = #tpu.pipeline_mode<synchronous>, transform_indices = @transform_4, window_bounds = array<i64: 1, 1>}, {transform_indices = @transform_5, window_bounds = array<i64: 1, 256>}]} {
    %c0_i32 = arith.constant 0 : i32
    %c256_i32 = arith.constant 256 : i32
    %0 = arith.muli %c0_i32, %c256_i32 : i32
    %1 = tpu.assume_multiple %0, 128 : i32
    %c0 = arith.constant 0 : index
    %2 = arith.index_cast %1 : i32 to index
    %3 = vector.load %arg1[%c0, %2] : memref<1x256xf32, #tpu.memory_space<vmem>>, vector<1x256xf32>
    %c0_0 = arith.constant 0 : index
    %c0_1 = arith.constant 0 : index
    %4 = vector.load %arg3[%c0_0, %c0_1] : memref<128x1xf32, #tpu.memory_space<vmem>>, vector<128x1xf32>
    %c0_2 = arith.constant 0 : index
    %c0_3 = arith.constant 0 : index
    %5 = vector.load %arg2[%c0_2, %c0_3] : memref<128x1xf32, #tpu.memory_space<vmem>>, vector<128x1xf32>
    %6 = vector.broadcast %5 : vector<128x1xf32> to vector<128x256xf32>
    %7 = vector.broadcast %3 : vector<1x256xf32> to vector<128x256xf32>
    %8 = arith.mulf %6, %7 : vector<128x256xf32>
    %9 = vector.broadcast %4 : vector<128x1xf32> to vector<128x256xf32>
    %10 = arith.addf %9, %8 : vector<128x256xf32>
    %cst = arith.constant 0.000000e+00 : f32
    %11 = vector.broadcast %cst : f32 to vector<128x256xf32>
    %12 = arith.maximumf %10, %11 : vector<128x256xf32>
    %c0_4 = arith.constant 0 : index
    %c0_5 = arith.constant 0 : index
    %13 = vector.load %arg4[%c0_4, %c0_5] : memref<8x128xf32, #tpu.memory_space<vmem>>, vector<8x128xf32>
    %cst_6 = arith.constant dense<0.000000e+00> : vector<8x256xf32>
    %14 = tpu.matmul %13, %12, %cst_6 {dimension_numbers = #tpu.dot_dimension_numbers<[1], [0], [0], [1], [0, 0, 1, 1], [], []>} : vector<8x128xf32>, vector<128x256xf32>, vector<8x256xf32> -> vector<8x256xf32>
    %15 = vector.extract_strided_slice %14 {offsets = [0, 0], sizes = [1, 256], strides = [1, 1]} : vector<8x256xf32> to vector<1x256xf32>
    %c0_7 = arith.constant 0 : index
    %c0_8 = arith.constant 0 : index
    %16 = vector.load %arg5[%c0_7, %c0_8] : memref<1x1xf32, #tpu.memory_space<vmem>>, vector<1x1xf32>
    %17 = vector.broadcast %16 : vector<1x1xf32> to vector<1x256xf32>
    %18 = arith.addf %15, %17 : vector<1x256xf32>
    %cst_9 = arith.constant 0.000000e+00 : f32
    %19 = vector.broadcast %cst_9 : f32 to vector<1x256xf32>
    %20 = arith.subf %19, %18 : vector<1x256xf32>
    %21 = math.exp %20 : vector<1x256xf32>
    %cst_10 = arith.constant 1.000000e+00 : f32
    %22 = vector.broadcast %cst_10 : f32 to vector<1x256xf32>
    %23 = arith.addf %22, %21 : vector<1x256xf32>
    %24 = tpu.reciprocal %23 {approx = true} : vector<1x256xf32> -> vector<1x256xf32>
    %c0_11 = arith.constant 0 : index
    %25 = arith.index_cast %1 : i32 to index
    %26 = vector.load %arg6[%c0_11, %25] : memref<1x256xf32, #tpu.memory_space<vmem>>, vector<1x256xf32>
    tpu.vector_store %arg6[%c0_11, %25], %24 {strides = array<i32>} : memref<1x256xf32, #tpu.memory_space<vmem>>, vector<1x256xf32>,
    return
  }
  func.func @transform_0(%arg0: i32) -> (i32, i32) {
    %c0_i32 = arith.constant 0 : i32
    %c0_i32_0 = arith.constant 0 : i32
    return %c0_i32, %arg0 : i32, i32
  }
  func.func @transform_1(%arg0: i32) -> (i32, i32) {
    %c0_i32 = arith.constant 0 : i32
    %c0_i32_0 = arith.constant 0 : i32
    %c0_i32_1 = arith.constant 0 : i32
    return %c0_i32, %c0_i32_0 : i32, i32
  }
  func.func @transform_2(%arg0: i32) -> (i32, i32) {
    %c0_i32 = arith.constant 0 : i32
    %c0_i32_0 = arith.constant 0 : i32
    %c0_i32_1 = arith.constant 0 : i32
    return %c0_i32, %c0_i32_0 : i32, i32
  }
  func.func @transform_3(%arg0: i32) -> (i32, i32) {
    %c0_i32 = arith.constant 0 : i32
    %c0_i32_0 = arith.constant 0 : i32
    %c0_i32_1 = arith.constant 0 : i32
    return %c0_i32, %c0_i32_0 : i32, i32
  }
  func.func @transform_4(%arg0: i32) -> (i32, i32) {
    %c0_i32 = arith.constant 0 : i32
    %c0_i32_0 = arith.constant 0 : i32
    %c0_i32_1 = arith.constant 0 : i32
    return %c0_i32, %c0_i32_0 : i32, i32
  }
  func.func @transform_5(%arg0: i32) -> (i32, i32) {
    %c0_i32 = arith.constant 0 : i32
    %c0_i32_0 = arith.constant 0 : i32
    return %c0_i32, %arg0 : i32, i32
  }
}

</mosaic_0001>

<bundles_post_ra>
// kernel: tpu_custom_call.1
= control target key start
LH: loop header
LB: loop body
LE: loop exit
PB: predicated region body
PF: predicated region fallthrough
CT: control target
= control target key end

     0   :  { %s1108_s0 = inlined_call_operand.vmem [shape: f32[1,512], index: 0, kind: input, shape index: {}]   ;;  %s1109_s1 = inlined_call_operand.vmem [shape: f32[128,1], index: 1, kind: input, shape index: {}]   ;;  %s1110_s2 = inlined_call_operand.vmem [shape: f32[128,1], index: 2, kind: input, shape index: {}]   ;;  %s1111_s3 = inlined_call_operand.vmem [shape: f32[8,128], index: 3, kind: input, shape index: {}]   ;;  %s1112_s4 = inlined_call_operand.<no memory space> [shape: f32[1,1], index: 4, kind: input, shape index: {}]   ;;  %s1113_s5 = inlined_call_operand.hbm [shape: f32[1,512], index: 5, kind: output, shape index: {}]  }
   0x1   :  { %v10_v0 = vstv %s1112_s4 }
   0x2   :  { %11 = vst [vmem:[#allocation2] sm:$0x1] %v10_v0 }
   0x3   :  { %12 = vsyncpa [#allocation4], 0 }
   0x4   :  { %14 = vsyncpa [#allocation4 + $0x1], 0  ;;  %s876_s20 = smov 0   ;;  %s878_s21 = smov 0  }
   0x5   :  { %s880_s22 = smov 0   ;;  %s882_s23 = smov 0  }
   0x6 LB: > { %s897_s4 = sadd.s32 4294967295, %s837_s23   ;;  %s713_s24 = sadd.s32 4294967294, %s837_s23   ;;  %s837_s23 = sphi %s882_s23, %s1119_s23   ;;  %s833_s22 = sphi %s880_s22, %s1118_s22   ;;  %s829_s21 = sphi %s878_s21, %s1117_s21   ;;  %s825_s20 = sphi %s876_s20, %s1116_s20  }
   0x7   : > { %s901_s25 = sadd.s32 1, %s837_s23   ;;  %s137_s26 = sadd.s32 1, %s833_s22 }
   0x8   : > { %s134_s27 = ssub.s32 %s837_s23, %s901_s25  ;;  %p147_p0 = scmp.ne.s32.totalorder %s833_s22, %s829_s21 }
   0x9   : > { %p135_p1 = scmp.eq.s32.totalorder %s134_s27, 0  ;;  %p148_p2 = scmp.eq.s32.totalorder %s897_s4, 1 }
   0xa   : > { %p153_p3 = scmp.ne.s32.totalorder %s829_s21, %s825_s20  ;;  %p154_p4 = scmp.eq.s32.totalorder %s713_s24, 1 }
   0xb   : > { %s912_s28 = scalar_select %p135_p1, %s833_s22, %s137_s26  }
   0xc   : > { %p914_p5 = por %p148_p2, %p147_p0  ;;  %p918_p6 = por %p154_p4, %p153_p3 }
   0xd   : > { %p716_p7 = scmp.ge.s32.totalorder %s837_s23, 1  ;;  %p192_p8 = scmp.lt.s32.totalorder %s837_s23, 3 }
   0xf   : > { %p193_p9 = pnand %p716_p7, %p192_p8 }
  0x10   : > { %s718_s19 = sshll.u32 (!%p193_p9), %s897_s4, 1  ;;  %s216_s8 = sand.u32 (!%p193_p9), 1, %s829_s21  }
  0x11   : > { %196 = sbr.rel (%p193_p9) target bundleno = 466 (0x1d2), region = 40  ;;  %p220_p10 = scmp.lt.s32.totalorder (!%p193_p9), %s718_s19, 3 }
  0x12   : > { %s717_s9 = sshll.u32 (!%p193_p9), %s216_s8, 1  ;;  %s724_s10 = sshll.u32 (!%p193_p9), %s897_s4, 5 }
  0x13   : > { %s218_s11 = scalar_lea.vmem (!%p193_p9), [#allocation3], %s717_s9  ;;  %s655_s15 = scalar_lea.hbm (!%p193_p9), %s1113_s5, %s724_s10 }
  0x14   : > { %s657_s12 = sshll.u32 (!%p193_p9), %s218_s11, 4  ;;  %s643_s16 = scalar_lea.sflag (!%p193_p9), [#allocation4], %s216_s8  ;;  %s658_s12 = int_to_ptr.vmem [resolvable:$true] %s657_s12 }
  0x15   : > { %s777_s17 = scalar_lea.vmem (!%p193_p9), %s658_s12, 32  ;;  %s842_s18 = smov (!%p193_p9), [#allocation3]  }
  0x16   : > { %v257_v1 = vld [vmem:[%s1109_s1 + $0x78] sm:$0xff]  ;;  %v839_v3 = vmov 0   ;;  %v256_v4 = vld [vmem:[%s1109_s1 + $0x70] sm:$0xff]  ;;  %v255_v5 = vld [vmem:[%s1109_s1 + $0x68] sm:$0xff]  ;;  %v840_v35 = vmov 0.0   ;;  %v339_v36 = vlaneseq  ;;  %s1121_s19 = smov (!%p220_p10, %s718_s19), 3  ;;  %p778_p11 = scmp.ne.s32.totalorder %s658_s12, %s777_s17 }
  0x17   : > { %v241_v2 = vld [vmem:[%s1110_s2 + $0x78] sm:$0xff]  ;;  %768 = vset.pattern.permute.xlu1 %v839_v3  ;;  %767 = vset.pattern.permute.xlu0 %v839_v3  ;;  %v254_v6 = vld [vmem:[%s1109_s1 + $0x60] sm:$0xff]  ;;  %v240_v7 = vld [vmem:[%s1110_s2 + $0x70] sm:$0xff]  ;;  %s222_s27 = scalar_lea.vmem %s1108_s0, %s1121_s19  ;;  %s781_s4 = sshll.u32 %s842_s18, 4  ;;  %s782_s4 = int_to_ptr.vmem [resolvable:$false] %s781_s4 }
  0x18   : > { %335 = vperm.xlu0 %767, %v257_v1   ;;  %458 = vperm.xlu1 %768, %v241_v2   ;;  %v253_v8 = vld [vmem:[%s1109_s1 + $0x58] sm:$0xff]  ;;  %v239_v9 = vld [vmem:[%s1110_s2 + $0x68] sm:$0xff]  ;;  %v252_v10 = vld [vmem:[%s1109_s1 + $0x50] sm:$0xff]  ;;  %v1022_v37 = vshrl.u32 %v339_v36, 7  ;;  %vm639_vm0 = vcmp.lt.s32.totalorder %v339_v36, 256  ;;  %p779_p12 = pnand %p778_p11, %p914_p5  ;;  %s783_s19 = scalar_lea.vmem %s782_s4, 64 }
  0x19   : > { %v238_v11 = vld [vmem:[%s1110_s2 + $0x60] sm:$0xff]  ;;  %v251_v12 = vld [vmem:[%s1109_s1 + $0x48] sm:$0xff]  ;;  %v237_v13 = vld [vmem:[%s1110_s2 + $0x58] sm:$0xff]  ;;  %590 = vmatprep.mubr.f32.mxu0 %v840_v35  ;;  %p784_p0 = scmp.lt.s32.totalorder %s658_s12, %s782_s4  ;;  %p785_p1 = scmp.lt.s32.totalorder %s783_s19, %s777_s17 }
  0x1a   : > { %v250_v14 = vld [vmem:[%s1109_s1 + $0x40] sm:$0xff]  ;;  %v236_v15 = vld [vmem:[%s1110_s2 + $0x50] sm:$0xff]  ;;  %v249_v16 = vld [vmem:[%s1109_s1 + $0x38] sm:$0xff]  ;;  %v341_v38 = vsub.s32 0, %v1022_v37  ;;  %v345_v39 = vsub.s32 1, %v1022_v37  ;;  %p780_p13 = pneg %p779_p12 }
  0x1b   : > { %v235_v17 = vld [vmem:[%s1110_s2 + $0x48] sm:$0xff]  ;;  %v248_v18 = vld [vmem:[%s1109_s1 + $0x30] sm:$0xff]  ;;  %v234_v19 = vld [vmem:[%s1110_s2 + $0x40] sm:$0xff]  ;;  %p786_p2 = por %p785_p1, %p784_p0 }
  0x1c   : > { %330 = vperm.xlu0 %767, %v256_v4   ;;  %325 = vperm.xlu1 %768, %v255_v5   ;;  %v247_v20 = vld [vmem:[%s1109_s1 + $0x28] sm:$0xff]  ;;  %v233_v21 = vld [vmem:[%s1110_s2 + $0x38] sm:$0xff]  ;;  %v246_v22 = vld [vmem:[%s1109_s1 + $0x20] sm:$0xff] }
  0x1d   : > { %v232_v23 = vld [vmem:[%s1110_s2 + $0x30] sm:$0xff]  ;;  %v245_v24 = vld [vmem:[%s1109_s1 + $0x18] sm:$0xff]  ;;  %v231_v25 = vld [vmem:[%s1110_s2 + $0x28] sm:$0xff]  ;;  %p787_p3 = pnand %p786_p2, %p780_p13 }
  0x1e   : > { %v244_v26 = vld [vmem:[%s1109_s1 + $0x10] sm:$0xff]  ;;  %v230_v27 = vld [vmem:[%s1110_s2 + $0x20] sm:$0xff]  ;;  %v243_v28 = vld [vmem:[%s1109_s1 + $0x8] sm:$0xff] }
  0x1f   : > { %v229_v29 = vld [vmem:[%s1110_s2 + $0x18] sm:$0xff]  ;;  %v242_v30 = vld [vmem:[%s1109_s1] sm:$0xff]  ;;  %v228_v31 = vld [vmem:[%s1110_s2 + $0x10] sm:$0xff] }
  0x20   : > { %320 = vperm.xlu1 %768, %v254_v6   ;;  %453 = vperm.xlu0 %767, %v240_v7   ;;  %v227_v32 = vld [vmem:[%s1110_s2 + $0x8] sm:$0xff]  ;;  %v226_v33 = vld [vmem:[%s1110_s2] sm:$0xff] }
  0x21   : > { %v597_v34 = vld [vmem:[#allocation2] sm:$0x1] }
  0x22   : > { %v225_v40 = vld [vmem:[%s222_s27] sm:$0x3] }
  0x23   : > { %v1031_v41 = vrot.slane %v225_v40, %v341_v38  ;;  %v1033_v42 = vrot.slane %v225_v40, %v345_v39 }
  0x24   : > { %315 = vperm.xlu1 %768, %v253_v8   ;;  %448 = vperm.xlu0 %767, %v239_v9  }
  0x28   : > { %310 = vperm.xlu1 %768, %v252_v10   ;;  %443 = vperm.xlu0 %767, %v238_v11  }
  0x2c   : > { %305 = vperm.xlu1 %768, %v251_v12   ;;  %438 = vperm.xlu0 %767, %v237_v13  }
  0x30   : > { %300 = vperm.xlu1 %768, %v250_v14   ;;  %433 = vperm.xlu0 %767, %v236_v15  }
  0x34   : > { %295 = vperm.xlu1 %768, %v249_v16   ;;  %428 = vperm.xlu0 %767, %v235_v17  }
  0x38   : > { %290 = vperm.xlu1 %768, %v248_v18   ;;  %423 = vperm.xlu0 %767, %v234_v19  }
  0x3c   : > { %285 = vperm.xlu1 %768, %v247_v20   ;;  %418 = vperm.xlu0 %767, %v233_v21  }
  0x40   : > { %280 = vperm.xlu1 %768, %v246_v22   ;;  %413 = vperm.xlu0 %767, %v232_v23  }
  0x44   : > { %275 = vperm.xlu1 %768, %v245_v24   ;;  %408 = vperm.xlu0 %767, %v231_v25  }
  0x48   : > { %270 = vperm.xlu1 %768, %v244_v26   ;;  %403 = vperm.xlu0 %767, %v230_v27  }
  0x4c   : > { %265 = vperm.xlu1 %768, %v243_v28   ;;  %398 = vperm.xlu0 %767, %v229_v29  }
  0x50   : > { %260 = vperm.xlu1 %768, %v242_v30   ;;  %393 = vperm.xlu0 %767, %v228_v31  }
  0x54   : > { %388 = vperm.xlu0 %767, %v227_v32   ;;  %383 = vperm.xlu1 %768, %v226_v33  }
  0x58   : > { %600 = vperm.xlu0 %767, %v597_v34  }
  0x93   : > { %v336_v43 = vpop.permute.xlu0 %335  ;;  %v459_v44 = vpop.permute.xlu1 %458 }
  0x94   : > { %v379_v45 = vmul.f32 %v1031_v41, %v336_v43  ;;  %v380_v46 = vmul.f32 %v1033_v42, %v336_v43 }
  0x96   : > { %v491_v47 = vadd.f32 %v459_v44, %v379_v45  ;;  %v492_v48 = vadd.f32 %v459_v44, %v380_v46 }
  0x97   : > { %v331_v49 = vpop.permute.xlu0 %330  ;;  %v326_v50 = vpop.permute.xlu1 %325 }
  0x98   : > { %v524_v51 = vmax.f32 %v492_v48, 0.0  ;;  %v523_v52 = vmax.f32 %v491_v47, 0.0  ;;  %v377_v53 = vmul.f32 %v1031_v41, %v331_v49  ;;  %v378_v54 = vmul.f32 %v1033_v42, %v331_v49 }
  0x99   : > { %v375_v59 = vmul.f32 %v1031_v41, %v326_v50  ;;  %v376_v60 = vmul.f32 %v1033_v42, %v326_v50 }
  0x9a   : > { %526 = vmatprep.subr.mxu0 %v524_v51 }
  0x9b   : > { %v321_v55 = vpop.permute.xlu1 %320  ;;  %v454_v56 = vpop.permute.xlu0 %453  ;;  %527 = vmatpush1.msra.mxu0 %v523_v52 }
  0x9c   : > { %v489_v57 = vadd.f32 %v454_v56, %v377_v53  ;;  %v490_v58 = vadd.f32 %v454_v56, %v378_v54  ;;  %v373_v3 = vmul.f32 %v1031_v41, %v321_v55  ;;  %v374_v4 = vmul.f32 %v1033_v42, %v321_v55 }
  0x9e   : > { %v521_v61 = vmax.f32 %v489_v57, 0.0  ;;  %v522_v62 = vmax.f32 %v490_v58, 0.0 }
  0x9f   : > { %v316_v63 = vpop.permute.xlu1 %315  ;;  %v449_v0 = vpop.permute.xlu0 %448 }
  0xa0   : > { %v487_v1 = vadd.f32 %v449_v0, %v375_v59  ;;  %v488_v2 = vadd.f32 %v449_v0, %v376_v60  ;;  %528 = vmatprep.subr.mxu0 %v522_v62  ;;  %v371_v11 = vmul.f32 %v1031_v41, %v316_v63  ;;  %v372_v12 = vmul.f32 %v1033_v42, %v316_v63 }
  0xa1   : > { %529 = vmatpush1.msra.mxu0 %v521_v61 }
  0xa2   : > { %v519_v5 = vmax.f32 %v487_v1, 0.0  ;;  %v520_v6 = vmax.f32 %v488_v2, 0.0 }
  0xa3   : > { %v311_v7 = vpop.permute.xlu1 %310  ;;  %v444_v8 = vpop.permute.xlu0 %443 }
  0xa4   : > { %v485_v9 = vadd.f32 %v444_v8, %v373_v3  ;;  %v486_v10 = vadd.f32 %v444_v8, %v374_v4  ;;  %530 = vmatprep.subr.mxu0 %v520_v6  ;;  %v369_v19 = vmul.f32 %v1031_v41, %v311_v7  ;;  %v370_v20 = vmul.f32 %v1033_v42, %v311_v7 }
  0xa5   : > { %531 = vmatpush1.msra.mxu0 %v519_v5 }
  0xa6   : > { %v517_v13 = vmax.f32 %v485_v9, 0.0  ;;  %v518_v14 = vmax.f32 %v486_v10, 0.0 }
  0xa7   : > { %v306_v15 = vpop.permute.xlu1 %305  ;;  %v439_v16 = vpop.permute.xlu0 %438 }
  0xa8   : > { %v483_v17 = vadd.f32 %v439_v16, %v371_v11  ;;  %v484_v18 = vadd.f32 %v439_v16, %v372_v12  ;;  %532 = vmatprep.subr.mxu0 %v518_v14  ;;  %v367_v27 = vmul.f32 %v1031_v41, %v306_v15  ;;  %v368_v28 = vmul.f32 %v1033_v42, %v306_v15 }
  0xa9   : > { %533 = vmatpush1.msra.mxu0 %v517_v13 }
  0xaa   : > { %v515_v21 = vmax.f32 %v483_v17, 0.0  ;;  %v516_v22 = vmax.f32 %v484_v18, 0.0 }
  0xab   : > { %v301_v23 = vpop.permute.xlu1 %300  ;;  %v434_v24 = vpop.permute.xlu0 %433 }
  0xac   : > { %v481_v25 = vadd.f32 %v434_v24, %v369_v19  ;;  %v482_v26 = vadd.f32 %v434_v24, %v370_v20  ;;  %534 = vmatprep.subr.mxu0 %v516_v22  ;;  %v365_v35 = vmul.f32 %v1031_v41, %v301_v23  ;;  %v366_v39 = vmul.f32 %v1033_v42, %v301_v23 }
  0xad   : > { %535 = vmatpush1.msra.mxu0 %v515_v21 }
  0xae   : > { %v513_v29 = vmax.f32 %v481_v25, 0.0  ;;  %v514_v30 = vmax.f32 %v482_v26, 0.0 }
  0xaf   : > { %v296_v31 = vpop.permute.xlu1 %295  ;;  %v429_v32 = vpop.permute.xlu0 %428 }
  0xb0   : > { %v479_v33 = vadd.f32 %v429_v32, %v367_v27  ;;  %v480_v34 = vadd.f32 %v429_v32, %v368_v28  ;;  %536 = vmatprep.subr.mxu0 %v514_v30  ;;  %v363_v48 = vmul.f32 %v1031_v41, %v296_v31  ;;  %v364_v49 = vmul.f32 %v1033_v42, %v296_v31 }
  0xb1   : > { %537 = vmatpush1.msra.mxu0 %v513_v29 }
  0xb2   : > { %v511_v40 = vmax.f32 %v479_v33, 0.0  ;;  %v512_v43 = vmax.f32 %v480_v34, 0.0 }
  0xb3   : > { %v291_v44 = vpop.permute.xlu1 %290  ;;  %v424_v45 = vpop.permute.xlu0 %423 }
  0xb4   : > { %v477_v46 = vadd.f32 %v424_v45, %v365_v35  ;;  %v478_v47 = vadd.f32 %v424_v45, %v366_v39  ;;  %538 = vmatprep.subr.mxu0 %v512_v43  ;;  %v361_v56 = vmul.f32 %v1031_v41, %v291_v44  ;;  %v362_v57 = vmul.f32 %v1033_v42, %v291_v44 }
  0xb5   : > { %539 = vmatpush1.msra.mxu0 %v511_v40 }
  0xb6   : > { %v509_v50 = vmax.f32 %v477_v46, 0.0  ;;  %v510_v51 = vmax.f32 %v478_v47, 0.0 }
  0xb7   : > { %v286_v52 = vpop.permute.xlu1 %285  ;;  %v419_v53 = vpop.permute.xlu0 %418 }
  0xb8   : > { %v475_v54 = vadd.f32 %v419_v53, %v363_v48  ;;  %v476_v55 = vadd.f32 %v419_v53, %v364_v49  ;;  %540 = vmatprep.subr.mxu0 %v510_v51  ;;  %v359_v0 = vmul.f32 %v1031_v41, %v286_v52  ;;  %v360_v1 = vmul.f32 %v1033_v42, %v286_v52 }
  0xb9   : > { %541 = vmatpush1.msra.mxu0 %v509_v50 }
  0xba   : > { %v507_v58 = vmax.f32 %v475_v54, 0.0  ;;  %v508_v59 = vmax.f32 %v476_v55, 0.0 }
  0xbb   : > { %v281_v60 = vpop.permute.xlu1 %280  ;;  %v414_v61 = vpop.permute.xlu0 %413 }
  0xbc   : > { %v473_v62 = vadd.f32 %v414_v61, %v361_v56  ;;  %v474_v63 = vadd.f32 %v414_v61, %v362_v57  ;;  %542 = vmatprep.subr.mxu0 %v508_v59  ;;  %v357_v8 = vmul.f32 %v1031_v41, %v281_v60  ;;  %v358_v9 = vmul.f32 %v1033_v42, %v281_v60 }
  0xbd   : > { %543 = vmatpush1.msra.mxu0 %v507_v58 }
  0xbe   : > { %v505_v2 = vmax.f32 %v473_v62, 0.0  ;;  %v506_v3 = vmax.f32 %v474_v63, 0.0 }
  0xbf   : > { %v276_v4 = vpop.permute.xlu1 %275  ;;  %v409_v5 = vpop.permute.xlu0 %408 }
  0xc0   : > { %v471_v6 = vadd.f32 %v409_v5, %v359_v0  ;;  %v472_v7 = vadd.f32 %v409_v5, %v360_v1  ;;  %544 = vmatprep.subr.mxu0 %v506_v3  ;;  %v355_v16 = vmul.f32 %v1031_v41, %v276_v4  ;;  %v356_v17 = vmul.f32 %v1033_v42, %v276_v4 }
  0xc1   : > { %545 = vmatpush1.msra.mxu0 %v505_v2  ;;  %v841_v2 = vmov 1966171168  }
  0xc2   : > { %v503_v10 = vmax.f32 %v471_v6, 0.0  ;;  %v504_v11 = vmax.f32 %v472_v7, 0.0 }
  0xc3   : > { %v271_v12 = vpop.permute.xlu1 %270  ;;  %v404_v13 = vpop.permute.xlu0 %403 }
  0xc4   : > { %v469_v14 = vadd.f32 %v404_v13, %v357_v8  ;;  %v470_v15 = vadd.f32 %v404_v13, %v358_v9  ;;  %546 = vmatprep.subr.mxu0 %v504_v11  ;;  %v353_v24 = vmul.f32 %v1031_v41, %v271_v12  ;;  %v354_v25 = vmul.f32 %v1033_v42, %v271_v12 }
  0xc5   : > { %547 = vmatpush1.msra.mxu0 %v503_v10 }
  0xc6   : > { %v501_v18 = vmax.f32 %v469_v14, 0.0  ;;  %v502_v19 = vmax.f32 %v470_v15, 0.0 }
  0xc7   : > { %v266_v20 = vpop.permute.xlu1 %265  ;;  %v399_v21 = vpop.permute.xlu0 %398 }
  0xc8   : > { %v467_v22 = vadd.f32 %v399_v21, %v355_v16  ;;  %v468_v23 = vadd.f32 %v399_v21, %v356_v17  ;;  %548 = vmatprep.subr.mxu0 %v502_v19  ;;  %v351_v32 = vmul.f32 %v1031_v41, %v266_v20  ;;  %v352_v33 = vmul.f32 %v1033_v42, %v266_v20 }
  0xc9   : > { %549 = vmatpush1.msra.mxu0 %v501_v18 }
  0xca   : > { %v499_v26 = vmax.f32 %v467_v22, 0.0  ;;  %v500_v27 = vmax.f32 %v468_v23, 0.0 }
  0xcb   : > { %v261_v28 = vpop.permute.xlu1 %260  ;;  %v394_v29 = vpop.permute.xlu0 %393 }
  0xcc   : > { %v465_v30 = vadd.f32 %v394_v29, %v353_v24  ;;  %v466_v31 = vadd.f32 %v394_v29, %v354_v25  ;;  %550 = vmatprep.subr.mxu0 %v500_v27  ;;  %v350_v34 = vmul.f32 %v1033_v42, %v261_v28  ;;  %v349_v40 = vmul.f32 %v1031_v41, %v261_v28  ;;  %v525_v42 = vld [vmem:[%s1111_s3] sm:$0xff] }
  0xcd   : > { %551 = vmatpush1.msra.mxu0 %v499_v26 }
  0xce   : > { %v497_v35 = vmax.f32 %v465_v30, 0.0  ;;  %v498_v39 = vmax.f32 %v466_v31, 0.0 }
  0xcf   : > { %v389_v43 = vpop.permute.xlu0 %388  ;;  %v384_v44 = vpop.permute.xlu1 %383 }
  0xd0   : > { %v463_v45 = vadd.f32 %v389_v43, %v351_v32  ;;  %v464_v46 = vadd.f32 %v389_v43, %v352_v33  ;;  %v462_v47 = vadd.f32 %v384_v44, %v350_v34  ;;  %552 = vmatprep.subr.mxu0 %v498_v39  ;;  %v461_v48 = vadd.f32 %v384_v44, %v349_v40 }
  0xd1   : > { %553 = vmatpush1.msra.mxu0 %v497_v35 }
  0xd2   : > { %v495_v49 = vmax.f32 %v463_v45, 0.0  ;;  %v496_v50 = vmax.f32 %v464_v46, 0.0  ;;  %v494_v51 = vmax.f32 %v462_v47, 0.0  ;;  %v493_v52 = vmax.f32 %v461_v48, 0.0 }
  0xd3   : > { %v601_v41 = vpop.permute.xlu0 %600 }
  0xd4   : > { %554 = vmatprep.subr.mxu0 %v496_v50  ;;  %v606_v53 = vrot.slane %v601_v41, %v341_v38  ;;  %v623_v38 = vunpack.c.l.s4 %v841_v2 }
  0xd5   : > { %555 = vmatpush1.msra.mxu0 %v495_v49 }
  0xd6   : > { %556 = vmatprep.subr.mxu0 %v494_v51  ;;  %v624_v3 = vunpack.c.0.s8 %v623_v38 }
  0xd7   : > { %557 = vmatpush1.msra.mxu0 %v493_v52 }
  0xd8   : > { %591 = vmatmul.mubr.f32.vlgmr.msra.gmra.mxu0 %v525_v42  ;;  %v627_v5 = vsub.s32 %v624_v3, %v1022_v37 }
 0x198   : > { %v592_v54 = vpop.f32.mrf.mxu0 }
 0x199   : > { %v607_v55 = vadd.f32 %v606_v53, %v592_v54 }
 0x19a   : > { %v594_v56 = vpop.f32.mrf.mxu0 }
 0x19b   : > { %v609_v57 = vsub.f32 0.0, %v607_v55  ;;  %v608_v58 = vadd.f32 %v606_v53, %v594_v56 }
 0x19d   : > { %v611_v59 = vmul.f32 1.442695, %v609_v57  ;;  %v610_v60 = vsub.f32 0.0, %v608_v58 }
 0x19f   : > { %769 = vpow2.f32 %v611_v59  ;;  %v613_v61 = vmul.f32 1.442695, %v610_v60 }
 0x1a1   : > { %771 = vpow2.f32 %v613_v61 }
 0x1ac   : > { %v770_v62 = vpop.eup %769 }
 0x1ad   : > { %v615_v63 = vadd.f32 1.0, %v770_v62 }
 0x1ae   : > { %v772_v0 = vpop.eup %771 }
 0x1af   : > { %v616_v1 = vadd.f32 1.0, %v772_v0  ;;  %773 = vrcp.f32 %v615_v63 }
 0x1b1   : > { %775 = vrcp.f32 %v616_v1 }
 0x1bc   : > { %v774_v4 = vpop.eup %773 }
 0x1be   : > { %v776_v6 = vpop.eup %775 }
 0x1bf   : > { %v621_v7 = vcombine.low %v774_v4, %v776_v6 }
 0x1c1   : > { %v628_v8 = vrot.slane %v621_v7, %v627_v5 }
 0x1c3   : > { %v635_v9 = vrot.slane %v628_v8, %v627_v5 }
 0x1c5   : > { %641 = vst.msk [vmem:[%s218_s11] sm:$0x3] %vm639_vm0, %v635_v9 }
 0x1c6   : > { %790 = shalt.err (!%p787_p3)
}
 0x1c7   : > { %s791_s24 = scalar_lea.hbm %s655_s15, 32  ;;  %s795_s6 = scalar_lea.hbm %s1113_s5, 64 }
 0x1c8   : > { %p792_p4 = scmp.ne.s32.totalorder %s655_s15, %s791_s24  ;;  %p796_p9 = scmp.lt.s32.totalorder %s655_s15, %s1113_s5 }
 0x1c9   : > { %p797_p10 = scmp.lt.s32.totalorder %s795_s6, %s791_s24 }
 0x1ca   : > { %p793_p7 = pnand %p792_p4, %p914_p5 }
 0x1cb   : > { %p798_p11 = por %p797_p10, %p796_p9 }
 0x1cc   : > { %p794_p8 = pneg %p793_p7 }
 0x1ce   : > { %p799_p12 = pnand %p798_p11, %p794_p8 }
 0x1d0   : > { %802 = shalt.err (!%p799_p12)
}
 0x1d1   : > { %725 = dma.vmem_to_hbm [thread:$0]  (%p914_p5), %s658_s12, 32, %s655_s15, %s643_s16  }
 0x1d2 PF: > { %p731_p13 = scmp.ge.s32.totalorder %s837_s23, 2  ;;  %s669_s9 = sand.u32 1, %s825_s20  }
 0x1d3   : > { %s670_s10 = scalar_lea.sflag [#allocation4], %s669_s9 }
 0x1d4   : > { %p728_p0 = pnand %p731_p13, %p918_p6 }
 0x1d6   : > { %p729_p1 = pneg %p728_p0 }
 0x1d8   : > { %820 = dma.done.wait (%p729_p1), %s670_s10, 32  }
 0x1d9   : > { %822 = vsyncadd (%p729_p1), %s670_s10, 4294967264  ;;  %p17_p2 = scmp.ge.s32.totalorder %s901_s25, 4   ;;  %s1116_s20 = smov %s829_s21 }
 0x1da   : > { %s1117_s21 = smov %s833_s22  ;;  %s1118_s22 = smov %s912_s28 }
 0x1db   : > { %s1119_s23 = smov %s901_s25  ;;  %19 = sbr.rel (!%p17_p2) target bundleno = 6 (0x6), region = 75 }
 0x1e0   :  { %675 = vsyncpa [#allocation4], 1 }
 0x1e1   :  { %677 = vsyncpa [#allocation4 + $0x1], 1 }

</bundles_post_ra>
